<compile_context>
chip_gen: v7x
topology: tpu7x:2x2x1
jax: 0.10.0
libtpu: 0.0.40
codegen_flags: <defaults>
</compile_context>

<pallas_src>
import jax
import jax.numpy as jnp
from jax.experimental import pallas as pl
from jax.experimental.pallas import tpu as pltpu

# ---------------- configuration (module hyper-parameters) ----------------
N = 2                      # batch
C_IN = 4                   # in_features
C_OUT = 8                  # out_features
DD = HH = WW = 8           # D=3 spatial extent
S = DD * HH * WW           # flattened voxel count per sample (512, lane axis)
KERNEL_SIZES = (2, 4)      # kernel_sizes (== strides)
MODE = "avg"
NUM_BRANCH = 1 + len(KERNEL_SIZES)          # multiplier
C_CAT = C_IN * NUM_BRANCH                   # linear input features

NCI = N * C_IN                              # stacked input channels  (8)
NCO = N * C_OUT                             # stacked output channels (16)
CELLS = tuple((DD // k) * (HH // k) * (WW // k) for k in KERNEL_SIZES)   # (64, 8)
CELLS_TOTAL = sum(CELLS)                    # 72


# ---------------- Pallas kernel (single invocation, whole batch) ----------------
def spp_kernel(x_ref, bt_ref, b_ref, w_ref, o_ref):
    """Whole batch in one step, channels-first, voxels on the lane axis.

    x_ref : (NCI, S)                 stacked samples (rows n*C_IN + c)
    bt_ref: (S, CELLS_TOTAL)         B^T, all pyramid levels concatenated
    b_ref : (CELLS_TOTAL, S)         B (0/1 cell-membership), same ordering
    w_ref : (NCO, NUM_BRANCH*NCI+1)  packed block-diag weight slices (+ bias col),
                                     averaging factors (1/S, 1/k^3) pre-folded
    o_ref : (NCO, S)                 stacked outputs (rows n*C_OUT + o)
    """
    x = x_ref[...]                                                   # (NCI, S)
    wpack = w_ref[...]                                               # (NCO, 25)

    # Global branch: pool first (1/S folded into the weight block), then linear.
    gx = jnp.sum(x, axis=1, keepdims=True)                           # (NCI, 1)
    g = jnp.dot(wpack[:, :NCI], gx,
                preferred_element_type=jnp.float32)                  # (NCO, 1)
    g = g + wpack[:, NUM_BRANCH * NCI:]                              # + bias column

    # All pyramid levels pooled with a single MXU matmul (B^T pre-transposed on host).
    p = jnp.dot(x, bt_ref[...],
                preferred_element_type=jnp.float32)                  # (NCI, CELLS_TOTAL)

    acc = None
    col = 0
    for i, cells in enumerate(CELLS):            # static unroll over pyramid levels
        wk = wpack[:, (i + 1) * NCI:(i + 2) * NCI]                   # (NCO, NCI)
        qk = jnp.dot(wk, p[:, col:col + cells],
                     preferred_element_type=jnp.float32)             # (NCO, cells)
        uk = jnp.dot(qk, b_ref[col:col + cells, :],
                     preferred_element_type=jnp.float32)             # (NCO, S)
        acc = uk if acc is None else acc + uk
        col += cells

    # g (NCO, 1) broadcasts over the lane axis.
    o_ref[...] = (acc + g).astype(o_ref.dtype)


def spp_forward(x_stacked, bcat_t, bcat, wpack):
    """x_stacked: (N*C_IN, S) -> (N*C_OUT, S). One kernel step, everything in VMEM."""
    vmem = pl.BlockSpec(memory_space=pltpu.MemorySpace.VMEM)
    return pl.pallas_call(
        spp_kernel,
        out_shape=jax.ShapeDtypeStruct((NCO, S), jnp.float32),
        in_specs=[vmem, vmem, vmem, vmem],
        out_specs=vmem,
    )(x_stacked, bcat_t, bcat, wpack)


# ---------------- glue: host-side operand packing ----------------
def build_operands(weight, bias):
    """Build (B^T, B, packed weights) for the kernel.

    B rows are ordered [k=2 cells (64), k=4 cells (8)].  Weight blocks are
    kron(I_N, W_i) with the averaging factor folded in; bias is the last column.
    """
    idx = jnp.arange(S)
    d = idx // (HH * WW)
    h = (idx // WW) % HH
    w = idx % WW

    bmats = []
    for k in KERNEL_SIZES:
        n_cells = (DD // k) * (HH // k) * (WW // k)
        cell = (d // k) * ((HH // k) * (WW // k)) + (h // k) * (WW // k) + (w // k)
        bmats.append((jnp.arange(n_cells)[:, None] == cell[None, :]).astype(jnp.float32))
    bcat = jnp.concatenate(bmats, axis=0)                  # (CELLS_TOTAL, S)
    bcat_t = bcat.T                                        # (S, CELLS_TOTAL)

    eye = jnp.eye(N, dtype=jnp.float32)
    blocks = [jnp.kron(eye, weight[:, :C_IN] / float(S))]  # global branch (mean folded)
    for i, k in enumerate(KERNEL_SIZES):
        wk = weight[:, (i + 1) * C_IN:(i + 2) * C_IN] / float(k ** 3)
        blocks.append(jnp.kron(eye, wk))
    bias_col = jnp.tile(bias.reshape(C_OUT, 1), (N, 1))    # (NCO, 1)
    wpack = jnp.concatenate(blocks + [bias_col], axis=1)   # (NCO, NUM_BRANCH*NCI + 1)
    return bcat_t, bcat, wpack


# ---------------- pure-JAX reference (dense SPP forward, channels-first) ----------------
def reference(x_vox, weight, bias):
    """x_vox: (N, C_IN, DD, HH, WW) -> (N, C_OUT, DD, HH, WW)."""
    gap = x_vox.mean(axis=(2, 3, 4), keepdims=True)
    branches = [jnp.broadcast_to(gap, x_vox.shape)]
    for k in KERNEL_SIZES:
        p = x_vox.reshape(N, C_IN, DD // k, k, HH // k, k, WW // k, k).mean(axis=(3, 5, 7))
        up = jnp.repeat(jnp.repeat(jnp.repeat(p, k, axis=2), k, axis=3), k, axis=4)
        branches.append(up)
    cat = jnp.concatenate(branches, axis=1)                # (N, C_CAT, DD, HH, WW)
    out = jnp.einsum('oc,ncdhw->nodhw', weight, cat)
    return out + bias[None, :, None, None, None]


if __name__ == "__main__":
    key = jax.random.PRNGKey(0)
    kx, kw, kb = jax.random.split(key, 3)

    # input voxel grid, natural channels-first dense layout (NCDHW)
    x_vox = jax.random.normal(kx, (N, C_IN, DD, HH, WW), dtype=jnp.float32)

    # "MinkowskiLinear" parameters: weight (C_OUT, C_CAT), bias (C_OUT,)
    weight = jax.random.normal(kw, (C_OUT, C_CAT), dtype=jnp.float32) * 0.1
    bias = jax.random.normal(kb, (C_OUT,), dtype=jnp.float32) * 0.1

    bcat_t, bcat, wpack = build_operands(weight, bias)
    x_stacked = x_vox.reshape(NCI, S)                      # pure reshape, no transpose

    out = spp_forward(x_stacked, bcat_t, bcat, wpack)      # (N*C_OUT, S)
    out = jax.block_until_ready(out)
    out_vox = out.reshape(N, C_OUT, DD, HH, WW)            # pure reshape, no transpose

    ref = jax.block_until_ready(reference(x_vox, weight, bias))
    assert out_vox.shape == ref.shape
    assert jnp.allclose(out_vox, ref, atol=1e-4, rtol=1e-4), "mismatch vs reference"

    print("KERNEL_OK")
</pallas_src>

<mosaic_0001>
module attributes {stable_mosaic.version = 11 : i64} {
  func.func @spp_kernel(%arg0: memref<8x512xf32, #tpu.memory_space<vmem>>, %arg1: memref<512x72xf32, #tpu.memory_space<vmem>>, %arg2: memref<72x512xf32, #tpu.memory_space<vmem>>, %arg3: memref<16x25xf32, #tpu.memory_space<vmem>>, %arg4: memref<16x512xf32, #tpu.memory_space<vmem>>) attributes {dimension_semantics = [], scalar_prefetch = 0 : i64, scratch_operands = 0 : i64, tpu.core_type = #tpu.core_type<tc>} {
    %c0 = arith.constant 0 : index
    %c0_0 = arith.constant 0 : index
    %0 = vector.load %arg0[%c0, %c0_0] : memref<8x512xf32, #tpu.memory_space<vmem>>, vector<8x512xf32>
    %c0_1 = arith.constant 0 : index
    %c0_2 = arith.constant 0 : index
    %1 = vector.load %arg3[%c0_1, %c0_2] : memref<16x25xf32, #tpu.memory_space<vmem>>, vector<16x25xf32>
    %cst = arith.constant dense<0.000000e+00> : vector<8xf32>
    %2 = vector.multi_reduction <add>, %0, %cst [1] : vector<8x512xf32> to vector<8xf32>
    %3 = vector.shape_cast %2 : vector<8xf32> to vector<8x1xf32>
    %4 = vector.extract_strided_slice %1 {offsets = [0, 0], sizes = [16, 8], strides = [1, 1]} : vector<16x25xf32> to vector<16x8xf32>
    %cst_3 = arith.constant dense<0.000000e+00> : vector<16x1xf32>
    %5 = tpu.matmul %4, %3, %cst_3 {dimension_numbers = #tpu.dot_dimension_numbers<[1], [0], [0], [1], [0, 0, 1, 1], [], []>} : vector<16x8xf32>, vector<8x1xf32>, vector<16x1xf32> -> vector<16x1xf32>
    %6 = vector.extract_strided_slice %1 {offsets = [0, 24], sizes = [16, 1], strides = [1, 1]} : vector<16x25xf32> to vector<16x1xf32>
    %7 = arith.addf %5, %6 : vector<16x1xf32>
    %c0_4 = arith.constant 0 : index
    %c0_5 = arith.constant 0 : index
    %8 = vector.load %arg1[%c0_4, %c0_5] : memref<512x72xf32, #tpu.memory_space<vmem>>, vector<512x72xf32>
    %cst_6 = arith.constant dense<0.000000e+00> : vector<8x72xf32>
    %9 = tpu.matmul %0, %8, %cst_6 {dimension_numbers = #tpu.dot_dimension_numbers<[1], [0], [0], [1], [0, 0, 1, 1], [], []>} : vector<8x512xf32>, vector<512x72xf32>, vector<8x72xf32> -> vector<8x72xf32>
    %10 = vector.extract_strided_slice %1 {offsets = [0, 8], sizes = [16, 8], strides = [1, 1]} : vector<16x25xf32> to vector<16x8xf32>
    %11 = vector.extract_strided_slice %9 {offsets = [0, 0], sizes = [8, 64], strides = [1, 1]} : vector<8x72xf32> to vector<8x64xf32>
    %cst_7 = arith.constant dense<0.000000e+00> : vector<16x64xf32>
    %12 = tpu.matmul %10, %11, %cst_7 {dimension_numbers = #tpu.dot_dimension_numbers<[1], [0], [0], [1], [0, 0, 1, 1], [], []>} : vector<16x8xf32>, vector<8x64xf32>, vector<16x64xf32> -> vector<16x64xf32>
    %c0_8 = arith.constant 0 : index
    %c0_9 = arith.constant 0 : index
    %13 = vector.load %arg2[%c0_8, %c0_9] : memref<72x512xf32, #tpu.memory_space<vmem>>, vector<64x512xf32>
    %cst_10 = arith.constant dense<0.000000e+00> : vector<16x512xf32>
    %14 = tpu.matmul %12, %13, %cst_10 {dimension_numbers = #tpu.dot_dimension_numbers<[1], [0], [0], [1], [0, 0, 1, 1], [], []>} : vector<16x64xf32>, vector<64x512xf32>, vector<16x512xf32> -> vector<16x512xf32>
    %15 = vector.extract_strided_slice %1 {offsets = [0, 16], sizes = [16, 8], strides = [1, 1]} : vector<16x25xf32> to vector<16x8xf32>
    %16 = vector.extract_strided_slice %9 {offsets = [0, 64], sizes = [8, 8], strides = [1, 1]} : vector<8x72xf32> to vector<8x8xf32>
    %cst_11 = arith.constant dense<0.000000e+00> : vector<16x8xf32>
    %17 = tpu.matmul %15, %16, %cst_11 {dimension_numbers = #tpu.dot_dimension_numbers<[1], [0], [0], [1], [0, 0, 1, 1], [], []>} : vector<16x8xf32>, vector<8x8xf32>, vector<16x8xf32> -> vector<16x8xf32>
    %c64 = arith.constant 64 : index
    %c0_12 = arith.constant 0 : index
    %18 = vector.load %arg2[%c64, %c0_12] : memref<72x512xf32, #tpu.memory_space<vmem>>, vector<8x512xf32>
    %cst_13 = arith.constant dense<0.000000e+00> : vector<16x512xf32>
    %19 = tpu.matmul %17, %18, %cst_13 {dimension_numbers = #tpu.dot_dimension_numbers<[1], [0], [0], [1], [0, 0, 1, 1], [], []>} : vector<16x8xf32>, vector<8x512xf32>, vector<16x512xf32> -> vector<16x512xf32>
    %20 = arith.addf %14, %19 : vector<16x512xf32>
    %21 = vector.broadcast %7 : vector<16x1xf32> to vector<16x512xf32>
    %22 = arith.addf %20, %21 : vector<16x512xf32>
    %c0_14 = arith.constant 0 : index
    %c0_15 = arith.constant 0 : index
    %23 = vector.load %arg4[%c0_14, %c0_15] : memref<16x512xf32, #tpu.memory_space<vmem>>, vector<16x512xf32>
    tpu.vector_store %arg4[%c0_14, %c0_15], %22 {strides = array<i32>} : memref<16x512xf32, #tpu.memory_space<vmem>>, vector<16x512xf32>,
    return
  }
}

</mosaic_0001>

<bundles_post_ra>
// kernel: tpu_custom_call.1
= control target key start
LH: loop header
LB: loop body
LE: loop exit
PB: predicated region body
PF: predicated region fallthrough
CT: control target
= control target key end

     0   :  { %s1545_s0 = inlined_call_operand.vmem [shape: f32[8,512], index: 0, kind: input, shape index: {}]   ;;  %s1546_s1 = inlined_call_operand.vmem [shape: f32[512,72], index: 1, kind: input, shape index: {}]   ;;  %s1547_s2 = inlined_call_operand.vmem [shape: f32[72,512], index: 2, kind: input, shape index: {}]   ;;  %s1548_s3 = inlined_call_operand.vmem [shape: f32[16,25], index: 3, kind: input, shape index: {}]   ;;  %s1549_s4 = inlined_call_operand.hbm [shape: f32[16,512], index: 4, kind: output, shape index: {}]  }
   0x1   :  { %v1174_v0 = vld [vmem:[%s1545_s0] sm:$0xff]  ;;  %v19_v1 = vld [vmem:[%s1545_s0 + $0x8] sm:$0xff]  ;;  %v1182_v2 = vld [vmem:[%s1545_s0 + $0x10] sm:$0xff] }
   0x2   :  { %v24_v3 = vadd.f32 %v19_v1, %v1174_v0  ;;  %245 = vmatprep.mubr.f32.mxu1 %v19_v1 }
   0x3   :  { %9 = vsyncpa [#allocation3], 0  ;;  %v1188_v4 = vld [vmem:[%s1545_s0 + $0x18] sm:$0xff]  ;;  %v133_v7 = vld [vmem:[%s1546_s1 + $0x80] sm:$0xff]  ;;  %vm37_vm0 = vcmask 64512   ;;  %s1137_s8 = smov 112  }
   0x4   :  { %v25_v5 = vadd.f32 %v24_v3, %v1182_v2  ;;  %v134_v8 = vld [vmem:[%s1546_s1 + $0x88] sm:$0xff]  ;;  %v117_v10 = vld [vmem:[%s1546_s1] sm:$0xff]  ;;  %v135_v14 = vld [vmem:[%s1546_s1 + $0x90] sm:$0xff]  ;;  %s1138_s11 = smov 120   ;;  %s1139_s12 = smov 104   ;;  %vm687_vm1 = vcmask 523264  }
   0x5   :  { %v998_v9 = vpack.c.bf16 %v134_v8, %v133_v7  ;;  %v118_v11 = vld [vmem:[%s1546_s1 + $0x8] sm:$0xff]  ;;  %v1207_v12 = vld [vmem:[%s1548_s3] sm:$0xff]  ;;  %v136_v15 = vld [vmem:[%s1546_s1 + $0x98] sm:$0xff] }
   0x6   :  { %v26_v6 = vadd.f32 %v25_v5, %v1188_v4  ;;  %v1000_v13 = vpack.c.bf16 %v118_v11, %v117_v10  ;;  %985 = vmatprep.mubr.msk.f32.mxu0 %vm37_vm0, %v1207_v12  ;;  %v1002_v16 = vpack.c.bf16 %v136_v15, %v135_v14  ;;  %v119_v17 = vld [vmem:[%s1546_s1 + $0x10] sm:$0xff]  ;;  %v120_v18 = vld [vmem:[%s1546_s1 + $0x18] sm:$0xff]  ;;  %v137_v20 = vld [vmem:[%s1546_s1 + $0xa0] sm:$0xff]  ;;  %436 = vrot.lane.b32.xlu1 %v1207_v12, %s1137_s8 }
   0x7   :  { %999 = vmatprep.subr.bf16.mxu1 %v998_v9  ;;  %v1004_v19 = vpack.c.bf16 %v120_v18, %v119_v17  ;;  %v138_v21 = vld [vmem:[%s1546_s1 + $0xa8] sm:$0xff]  ;;  %v121_v23 = vld [vmem:[%s1546_s1 + $0x20] sm:$0xff]  ;;  %v139_v26 = vld [vmem:[%s1546_s1 + $0xb0] sm:$0xff] }
   0x8   :  { %27 = vadd.xlane.f32.xlu0 %v26_v6  ;;  %1001 = vmatpush3.bf16.msra.mxu1 %v1000_v13  ;;  %v1006_v22 = vpack.c.bf16 %v138_v21, %v137_v20  ;;  %v122_v24 = vld [vmem:[%s1546_s1 + $0x28] sm:$0xff]  ;;  %v140_v27 = vld [vmem:[%s1546_s1 + $0xb8] sm:$0xff]  ;;  %v123_v29 = vld [vmem:[%s1546_s1 + $0x30] sm:$0xff] }
   0x9   :  { %1003 = vmatprep.subr.bf16.mxu1 %v1002_v16  ;;  %v1008_v25 = vpack.c.bf16 %v122_v24, %v121_v23  ;;  %v1010_v28 = vpack.c.bf16 %v140_v27, %v139_v26  ;;  %v124_v30 = vld [vmem:[%s1546_s1 + $0x38] sm:$0xff]  ;;  %v141_v32 = vld [vmem:[%s1546_s1 + $0xc0] sm:$0xff]  ;;  %v142_v33 = vld [vmem:[%s1546_s1 + $0xc8] sm:$0xff] }
   0xa   :  { %v1012_v31 = vpack.c.bf16 %v124_v30, %v123_v29  ;;  %v1014_v34 = vpack.c.bf16 %v142_v33, %v141_v32  ;;  %v125_v35 = vld [vmem:[%s1546_s1 + $0x40] sm:$0xff]  ;;  %v126_v36 = vld [vmem:[%s1546_s1 + $0x48] sm:$0xff]  ;;  %v143_v38 = vld [vmem:[%s1546_s1 + $0xd0] sm:$0xff] }
   0xb   :  { %v1016_v37 = vpack.c.bf16 %v126_v36, %v125_v35  ;;  %v144_v39 = vld [vmem:[%s1546_s1 + $0xd8] sm:$0xff]  ;;  %v127_v41 = vld [vmem:[%s1546_s1 + $0x50] sm:$0xff]  ;;  %v145_v44 = vld [vmem:[%s1546_s1 + $0xe0] sm:$0xff] }
   0xc   :  { %1005 = vmatpush3.bf16.msra.mxu1 %v1004_v19  ;;  %v1018_v40 = vpack.c.bf16 %v144_v39, %v143_v38  ;;  %v128_v42 = vld [vmem:[%s1546_s1 + $0x58] sm:$0xff]  ;;  %v146_v45 = vld [vmem:[%s1546_s1 + $0xe8] sm:$0xff]  ;;  %v129_v47 = vld [vmem:[%s1546_s1 + $0x60] sm:$0xff] }
   0xd   :  { %1007 = vmatprep.subr.bf16.mxu1 %v1006_v22  ;;  %v1020_v43 = vpack.c.bf16 %v128_v42, %v127_v41  ;;  %v1022_v46 = vpack.c.bf16 %v146_v45, %v145_v44  ;;  %v130_v48 = vld [vmem:[%s1546_s1 + $0x68] sm:$0xff]  ;;  %v147_v50 = vld [vmem:[%s1546_s1 + $0xf0] sm:$0xff]  ;;  %v148_v51 = vld [vmem:[%s1546_s1 + $0xf8] sm:$0xff] }
   0xe   :  { %v1024_v49 = vpack.c.bf16 %v130_v48, %v129_v47  ;;  %v1026_v52 = vpack.c.bf16 %v148_v51, %v147_v50  ;;  %v131_v53 = vld [vmem:[%s1546_s1 + $0x70] sm:$0xff]  ;;  %v132_v54 = vld [vmem:[%s1546_s1 + $0x78] sm:$0xff]  ;;  %v23_v56 = vld [vmem:[%s1548_s3 + $0x8] sm:$0xff] }
   0xf   :  { %v1028_v55 = vpack.c.bf16 %v132_v54, %v131_v53  ;;  %438 = vrot.lane.b32.xlu1 %v23_v56, %s1137_s8  ;;  %v165_v57 = vld [vmem:[%s1546_s1 + $0x180] sm:$0xff]  ;;  %v166_v58 = vld [vmem:[%s1546_s1 + $0x188] sm:$0xff]  ;;  %v167_v61 = vld [vmem:[%s1546_s1 + $0x190] sm:$0xff] }
  0x10   :  { %1009 = vmatpush3.bf16.msra.mxu1 %v1008_v25  ;;  %v149_v59 = vld [vmem:[%s1546_s1 + $0x100] sm:$0xff]  ;;  %v150_v60 = vld [vmem:[%s1546_s1 + $0x108] sm:$0xff]  ;;  %v168_v62 = vld [vmem:[%s1546_s1 + $0x198] sm:$0xff]  ;;  %v1030_v63 = vpack.c.bf16 %v166_v58, %v165_v57 }
  0x11   :  { %1011 = vmatprep.subr.bf16.mxu1 %v1010_v28  ;;  %v1032_v1 = vpack.c.bf16 %v150_v60, %v149_v59  ;;  %v1034_v3 = vpack.c.bf16 %v168_v62, %v167_v61  ;;  %v151_v5 = vld [vmem:[%s1546_s1 + $0x110] sm:$0xff]  ;;  %v152_v6 = vld [vmem:[%s1546_s1 + $0x118] sm:$0xff]  ;;  %v169_v7 = vld [vmem:[%s1546_s1 + $0x1a0] sm:$0xff] }
  0x12   :  { %v170_v8 = vld [vmem:[%s1546_s1 + $0x1a8] sm:$0xff]  ;;  %v1036_v9 = vpack.c.bf16 %v152_v6, %v151_v5  ;;  %v153_v11 = vld [vmem:[%s1546_s1 + $0x120] sm:$0xff]  ;;  %v171_v13 = vld [vmem:[%s1546_s1 + $0x1b0] sm:$0xff] }
  0x13   :  { %321 = vrot.lane.b32.xlu1 %v1207_v12, %s1138_s11  ;;  %v1038_v10 = vpack.c.bf16 %v170_v8, %v169_v7  ;;  %v172_v14 = vld [vmem:[%s1546_s1 + $0x1b8] sm:$0xff]  ;;  %v155_v16 = vld [vmem:[%s1546_s1 + $0x130] sm:$0xff]  ;;  %v173_v18 = vld [vmem:[%s1546_s1 + $0x1c0] sm:$0xff] }
  0x14   :  { %1013 = vmatpush3.bf16.msra.mxu1 %v1012_v31  ;;  %v1042_v15 = vpack.c.bf16 %v172_v14, %v171_v13  ;;  %v156_v17 = vld [vmem:[%s1546_s1 + $0x138] sm:$0xff]  ;;  %v174_v19 = vld [vmem:[%s1546_s1 + $0x1c8] sm:$0xff]  ;;  %v157_v22 = vld [vmem:[%s1546_s1 + $0x140] sm:$0xff] }
  0x15   :  { %1015 = vmatprep.subr.bf16.mxu1 %v1014_v34  ;;  %v1044_v20 = vpack.c.bf16 %v156_v17, %v155_v16  ;;  %v1046_v21 = vpack.c.bf16 %v174_v19, %v173_v18  ;;  %v158_v23 = vld [vmem:[%s1546_s1 + $0x148] sm:$0xff]  ;;  %v175_v24 = vld [vmem:[%s1546_s1 + $0x1d0] sm:$0xff]  ;;  %v176_v25 = vld [vmem:[%s1546_s1 + $0x1d8] sm:$0xff] }
  0x16   :  { %v1048_v26 = vpack.c.bf16 %v158_v23, %v157_v22  ;;  %v1050_v27 = vpack.c.bf16 %v176_v25, %v175_v24  ;;  %v159_v28 = vld [vmem:[%s1546_s1 + $0x150] sm:$0xff]  ;;  %v160_v29 = vld [vmem:[%s1546_s1 + $0x158] sm:$0xff]  ;;  %v177_v30 = vld [vmem:[%s1546_s1 + $0x1e0] sm:$0xff] }
  0x17   :  { %323 = vrot.lane.b32.xlu1 %v23_v56, %s1138_s11  ;;  %v178_v31 = vld [vmem:[%s1546_s1 + $0x1e8] sm:$0xff]  ;;  %v1052_v32 = vpack.c.bf16 %v160_v29, %v159_v28  ;;  %v161_v34 = vld [vmem:[%s1546_s1 + $0x160] sm:$0xff]  ;;  %v179_v36 = vld [vmem:[%s1546_s1 + $0x1f0] sm:$0xff] }
  0x18   :  { %1017 = vmatpush3.bf16.msra.mxu1 %v1016_v37  ;;  %v1054_v33 = vpack.c.bf16 %v178_v31, %v177_v30  ;;  %v162_v35 = vld [vmem:[%s1546_s1 + $0x168] sm:$0xff]  ;;  %v180_v37 = vld [vmem:[%s1546_s1 + $0x1f8] sm:$0xff]  ;;  %v163_v41 = vld [vmem:[%s1546_s1 + $0x170] sm:$0xff] }
  0x19   :  { %1019 = vmatprep.subr.bf16.mxu1 %v1018_v40  ;;  %v1056_v39 = vpack.c.bf16 %v162_v35, %v161_v34  ;;  %v1058_v40 = vpack.c.bf16 %v180_v37, %v179_v36  ;;  %v164_v42 = vld [vmem:[%s1546_s1 + $0x178] sm:$0xff]  ;;  %v524_v60 = vld [vmem:[%s1547_s2 + $0x108] sm:$0xff]  ;;  %v525_v5 = vld [vmem:[%s1547_s2 + $0x110] sm:$0xff] }
  0x1a   :  { %v1060_v44 = vpack.c.bf16 %v164_v42, %v163_v41  ;;  %v526_v62 = vld [vmem:[%s1547_s2 + $0x118] sm:$0xff]  ;;  %v408_v13 = vld [vmem:[%s1547_s2 + $0x20] sm:$0xff]  ;;  %v406_v14 = vld [vmem:[%s1547_s2 + $0x10] sm:$0xff] }
  0x1b   :  { %31 = vrot.lane.b32.xlu1 %v1207_v12, %s1139_s12  ;;  %v154_v12 = vld [vmem:[%s1546_s1 + $0x128] sm:$0xff]  ;;  %s1141_s1 = smov 64   ;;  %v411_v7 = vld [vmem:[%s1547_s2 + $0x38] sm:$0xff]  ;;  %v416_v22 = vld [vmem:[%s1547_s2 + $0x60] sm:$0xff] }
  0x1c   :  { %1021 = vmatpush3.bf16.msra.mxu1 %v1020_v43  ;;  %v417_v16 = vld [vmem:[%s1547_s2 + $0x68] sm:$0xff]  ;;  %v415_v17 = vld [vmem:[%s1547_s2 + $0x58] sm:$0xff]  ;;  %v414_v24 = vld [vmem:[%s1547_s2 + $0x50] sm:$0xff] }
  0x1d   :  { %1023 = vmatprep.subr.bf16.mxu1 %v1022_v46  ;;  %v1140_v46 = vmov 0   ;;  %v419_v18 = vld [vmem:[%s1547_s2 + $0x78] sm:$0xff]  ;;  %v418_v25 = vld [vmem:[%s1547_s2 + $0x70] sm:$0xff]  ;;  %v425_v30 = vld [vmem:[%s1547_s2 + $0xa8] sm:$0xff] }
  0x1e   :  { %1111 = vset.pattern.permute.xlu1 %v1140_v46  ;;  %1112 = vset.pattern.permute.xlu0 %v1140_v46  ;;  %v1082_v29 = vpack.c.bf16 %v419_v18, %v415_v17  ;;  %v423_v31 = vld [vmem:[%s1547_s2 + $0x98] sm:$0xff]  ;;  %v1084_v34 = vpack.c.bf16 %v418_v25, %v414_v24  ;;  %v420_v35 = vld [vmem:[%s1547_s2 + $0x80] sm:$0xff]  ;;  %v429_v41 = vld [vmem:[%s1547_s2 + $0xc8] sm:$0xff] }
  0x1f   :  { %33 = vrot.lane.b32.xlu1 %v23_v56, %s1139_s12  ;;  %v424_v36 = vld [vmem:[%s1547_s2 + $0xa0] sm:$0xff]  ;;  %v433_v42 = vld [vmem:[%s1547_s2 + $0xe8] sm:$0xff] }
  0x20   :  { %1025 = vmatpush3.bf16.msra.mxu1 %v1024_v49 }
  0x21   :  { %1027 = vmatprep.subr.bf16.mxu1 %v1026_v52 }
  0x24   :  { %1029 = vmatpush3.bf16.msra.mxu1 %v1028_v55 }
  0x27   :  { %246 = vmatmul.mubr.f32.vlgmr.msra.gmra.mrb[0].mxu1 %v1174_v0 }
  0x78   :  { %v437_v38 = vpop.permute.xlu1 %436 }
  0x81   :  { %v439_v43 = vpop.permute.xlu1 %438 }
  0x85   :  { %v322_v45 = vpop.permute.xlu1 %321 }
  0x86   :  { %990 = vmatprep.mubr.msk.f32.mxu1 %vm37_vm0, %v322_v45  ;;  %v1072_v45 = vpack.c.bf16 %v424_v36, %v420_v35 }
  0x89   :  { %v324_v50 = vpop.permute.xlu1 %323 }
  0x8d   :  { %v32_v52 = vpop.permute.xlu1 %31 }
  0x91   :  { %v34_v59 = vpop.permute.xlu1 %33 }
  0x95   :  { %v28_v0 = vpop.xlane.xlu0 %27 }
  0x96   :  { %983 = vmatprep.subr.mxu0 %v28_v0 }
  0x97   :  { %984 = vmatpush3.msra.mxu0 %v28_v0  ;;  %v409_v0 = vld [vmem:[%s1547_s2 + $0x28] sm:$0xff] }
  0x98   :  { %986 = vmatmul.mubr.msk.f32.vlgmr.msra.gmra.mrb[0].mxu0 %vm37_vm0, %v23_v56  ;;  %1031 = vmatprep.subr.bf16.mxu0 %v1030_v63  ;;  %v405_v63 = vld [vmem:[%s1547_s2 + $0x8] sm:$0xff] }
  0x99   :  { %1033 = vmatpush3.bf16.msra.mxu0 %v1032_v1  ;;  %315 = vmatprep.mubr.f32.mxu0 %v1188_v4  ;;  %v1040_v4 = vpack.c.bf16 %v154_v12, %v153_v11  ;;  %v407_v1 = vld [vmem:[%s1547_s2 + $0x18] sm:$0xff]  ;;  %v1062_v6 = vpack.c.bf16 %v409_v0, %v405_v63  ;;  %v404_v12 = vld [vmem:[%s1547_s2] sm:$0xff] }
  0x9a   :  { %1035 = vmatprep.subr.bf16.mxu0 %v1034_v3  ;;  %v523_v3 = vld [vmem:[%s1547_s2 + $0x100] sm:$0xff]  ;;  %v1078_v8 = vpack.c.bf16 %v411_v7, %v407_v1  ;;  %v1064_v19 = vpack.c.bf16 %v408_v13, %v404_v12 }
  0x9d   :  { %1037 = vmatpush3.bf16.msra.mxu0 %v1036_v9  ;;  %v1142_v9 = vmov 0.0  }
  0x9e   :  { %1039 = vmatprep.subr.bf16.mxu0 %v1038_v10 }
  0xa1   :  { %1041 = vmatpush3.bf16.msra.mxu0 %v1040_v4  ;;  %v410_v4 = vld [vmem:[%s1547_s2 + $0x30] sm:$0xff] }
  0xa2   :  { %1043 = vmatprep.subr.bf16.mxu0 %v1042_v15  ;;  %v413_v15 = vld [vmem:[%s1547_s2 + $0x48] sm:$0xff] }
  0xa3   :  { %v1066_v28 = vpack.c.bf16 %v417_v16, %v413_v15 }
  0xa5   :  { %1045 = vmatpush3.bf16.msra.mxu0 %v1044_v20  ;;  %v1080_v20 = vpack.c.bf16 %v410_v4, %v406_v14 }
  0xa6   :  { %1047 = vmatprep.subr.bf16.mxu0 %v1046_v21  ;;  %v412_v21 = vld [vmem:[%s1547_s2 + $0x40] sm:$0xff] }
  0xa9   :  { %1049 = vmatpush3.bf16.msra.mxu0 %v1048_v26  ;;  %v421_v26 = vld [vmem:[%s1547_s2 + $0x88] sm:$0xff] }
  0xaa   :  { %1051 = vmatprep.subr.bf16.mxu0 %v1050_v27  ;;  %v1070_v37 = vpack.c.bf16 %v425_v30, %v421_v26 }
  0xad   :  { %1053 = vmatpush3.bf16.msra.mxu0 %v1052_v32  ;;  %v427_v32 = vld [vmem:[%s1547_s2 + $0xb8] sm:$0xff] }
  0xae   :  { %1055 = vmatprep.subr.bf16.mxu0 %v1054_v33  ;;  %v1068_v33 = vpack.c.bf16 %v416_v22, %v412_v21 }
  0xb1   :  { %1057 = vmatpush3.bf16.msra.mxu0 %v1056_v39  ;;  %v422_v39 = vld [vmem:[%s1547_s2 + $0x90] sm:$0xff] }
  0xb2   :  { %1059 = vmatprep.subr.bf16.mxu0 %v1058_v40  ;;  %v426_v40 = vld [vmem:[%s1547_s2 + $0xb0] sm:$0xff] }
  0xb3   :  { %v1088_v46 = vpack.c.bf16 %v426_v40, %v422_v39 }
  0xb5   :  { %1061 = vmatpush3.bf16.msra.mxu0 %v1060_v44  ;;  %v435_v44 = vld [vmem:[%s1547_s2 + $0xf8] sm:$0xff] }
  0xb8   :  { %316 = vmatmul.mubr.f32.vlgmr.msra.gmra.mrb[2].mxu0 %v1182_v2 }
  0xb9   :  { %995 = vmatprep.mubr.msk.f32.mxu0 %vm37_vm0, %v437_v38  ;;  %v1086_v38 = vpack.c.bf16 %v427_v32, %v423_v31 }
  0xfa   :  { %v939_v47 = vpop.f32.mrb[0].mxu1 }
  0xfb   :  { %v940_v48 = vpop.f32.mrb[1].mxu1 }
  0xfc   :  { %v941_v49 = vadd.f32 %v940_v48, %v939_v47  ;;  %v428_v47 = vld [vmem:[%s1547_s2 + $0xc0] sm:$0xff]  ;;  %v1074_v48 = vpack.c.bf16 %v433_v42, %v429_v41 }
 0x16b   :  { %v987_v51 = vpop.f32.mrb[0].mxu0 }
 0x16c   :  { %v108_v53 = vpop.f32.mrb[1].mxu0  ;;  %v114_v2 = vadd.f32 %v987_v51, %v34_v59  ;;  %v430_v51 = vld [vmem:[%s1547_s2 + $0xd0] sm:$0xff] }
 0x16d   :  { %v109_v54 = vadd.f32 %v108_v53, %v32_v52  ;;  %v434_v52 = vld [vmem:[%s1547_s2 + $0xf0] sm:$0xff] }
 0x16f   :  { %850 = vperm.xlu1 %1111, %v109_v54   ;;  %v1092_v54 = vpack.c.bf16 %v434_v52, %v430_v51 }
 0x18b   :  { %v974_v55 = vpop.f32.mrb[2].mxu0 }
 0x18c   :  { %v975_v56 = vpop.f32.mrb[3].mxu0 }
 0x18d   :  { %v976_v57 = vadd.f32 %v975_v56, %v974_v55 }
 0x18f   :  { %v318_v58 = vadd.f32 %v976_v57, %v941_v49 }
 0x191   :  { %441 = vrot.lane.b32.xlu0 %v318_v58, %s1141_s1  ;;  %988 = vmatprep.subr.mxu1 %v318_v58 }
 0x192   :  { %989 = vmatpush3.msra.mxu1 %v318_v58 }
 0x193   :  { %991 = vmatmul.mubr.msk.f32.vlgmr.msra.gmra.mrb[2].mxu1 %vm37_vm0, %v324_v50  ;;  %533 = vmatprep.subr.mxu1 %v524_v60  ;;  %v432_v50 = vld [vmem:[%s1547_s2 + $0xe0] sm:$0xff] }
 0x194   :  { %534 = vmatpush1.msra.mxu1 %v523_v3  ;;  %597 = vmatprep.mubr.f32.mxu1 %v1142_v9  ;;  %v1076_v53 = vpack.c.bf16 %v432_v50, %v428_v47 }
 0x195   :  { %855 = vperm.xlu0 %1112, %v114_v2   ;;  %1063 = vmatprep.subr.bf16.mxu1 %v1062_v6 }
 0x1ee   :  { %v851_v55 = vpop.permute.xlu1 %850 }
 0x203   :  { %v442_v61 = vpop.permute.xlu0 %441 }
 0x204   :  { %993 = vmatprep.subr.mxu0 %v442_v61 }
 0x205   :  { %994 = vmatpush3.msra.mxu0 %v442_v61 }
 0x206   :  { %996 = vmatmul.mubr.msk.f32.vlgmr.msra.gmra.mrb[4].mxu0 %vm37_vm0, %v439_v43  ;;  %610 = vmatprep.subr.mxu0 %v526_v62  ;;  %v431_v43 = vld [vmem:[%s1547_s2 + $0xd8] sm:$0xff]  ;;  %s1143_s2 = smov [#allocation2]  }
 0x207   :  { %611 = vmatpush1.msra.mxu0 %v525_v5  ;;  %674 = vmatprep.mubr.f32.mxu0 %v1142_v9  ;;  %v1090_v49 = vpack.c.bf16 %v435_v44, %v431_v43  ;;  %s879_s7 = sshll.u32 %s1143_s2, 4  ;;  %s880_s7 = int_to_ptr.vmem [resolvable:$true] %s879_s7 }
 0x208   :  { %1079 = vmatprep.subr.bf16.mxu0 %v1078_v8  ;;  %s1113_s8 = scalar_lea.vmem %s880_s7, 1024  ;;  %p1118_p1 = scmp.lt.s32.totalorder %s880_s7, %s880_s7 }
 0x209   :  { %p1114_p0 = scmp.ne.s32.totalorder %s880_s7, %s1113_s8  ;;  %p1119_p2 = scmp.lt.s32.totalorder %s1113_s8, %s1113_s8 }
 0x20b   :  { %p1120_p3 = por %p1119_p2, %p1118_p1 }
 0x20d   :  { %p1121_p4 = pnand %p1120_p3, %p1114_p0 }
 0x214   :  { %v856_v63 = vpop.permute.xlu0 %855 }
 0x266   :  { %v1431_v10 = vpop.f32.mrb[2].mxu1 }
 0x267   :  { %v1433_v11 = vpop.f32.mrb[3].mxu1 }
 0x2d9   :  { %v997_v23 = vpop.f32.mrb[4].mxu0 }
 0x2da   :  { %v514_v27 = vpop.f32.mrb[5].mxu0 }
 0x2db   :  { %896 = vmatmul.mubr.msk.f32.vlgmr.msra.gmra.mrb[4].mxu1 %vm37_vm0, %v514_v27  ;;  %898 = vmatmul.mubr.msk.f32.vlgmr.msra.gmra.mrb[6].mxu0 %vm37_vm0, %v514_v27 }
 0x2dc   :  { %1065 = vmatpush1.bf16.msra.mxu1 %v1064_v19  ;;  %1081 = vmatpush1.bf16.msra.mxu0 %v1080_v20 }
 0x2dd   :  { %603 = vmatprep.mubr.f32.mxu1 %v1142_v9  ;;  %680 = vmatprep.mubr.f32.mxu0 %v1142_v9 }
 0x2de   :  { %1067 = vmatprep.subr.bf16.mxu1 %v1066_v28  ;;  %1083 = vmatprep.subr.bf16.mxu0 %v1082_v29 }
 0x2df   :  { %897 = vmatmul.mubr.msk.f32.gmra.mrb[6].mxu1 %vm37_vm0, %v997_v23  ;;  %899 = vmatmul.mubr.msk.f32.gmra.mrb[8].mxu0 %vm37_vm0, %v997_v23 }
 0x2e0   :  { %1069 = vmatpush1.bf16.msra.mxu1 %v1068_v33  ;;  %1085 = vmatpush1.bf16.msra.mxu0 %v1084_v34 }
 0x2e1   :  { %1071 = vmatprep.subr.bf16.mxu1 %v1070_v37  ;;  %1087 = vmatprep.subr.bf16.mxu0 %v1086_v38 }
 0x2e2   :  { %758 = vmatprep.mubr.f32.mxu1 %v1142_v9  ;;  %835 = vmatprep.mubr.f32.mxu0 %v1142_v9 }
 0x2e4   :  { %1073 = vmatpush1.bf16.msra.mxu1 %v1072_v45  ;;  %1089 = vmatpush1.bf16.msra.mxu0 %v1088_v46 }
 0x2e5   :  { %1075 = vmatprep.subr.bf16.mxu1 %v1074_v48  ;;  %1091 = vmatprep.subr.bf16.mxu0 %v1090_v49 }
 0x2e8   :  { %1077 = vmatpush1.bf16.msra.mxu1 %v1076_v53  ;;  %1093 = vmatpush1.bf16.msra.mxu0 %v1092_v54 }
 0x2eb   :  { %900 = vmatmul.mubr.msk.f32.vlgmr.msra.gmra.mrb[4].mxu1 %vm687_vm1, %v1433_v11  ;;  %902 = vmatmul.mubr.msk.f32.vlgmr.msra.gmra.mrb[6].mxu0 %vm687_vm1, %v1433_v11 }
 0x2ec   :  { %764 = vmatprep.mubr.f32.mxu1 %v1142_v9  ;;  %841 = vmatprep.mubr.f32.mxu0 %v1142_v9 }
 0x2ef   :  { %901 = vmatmul.mubr.msk.f32.gmra.mrb[6].mxu1 %vm687_vm1, %v1431_v10  ;;  %903 = vmatmul.mubr.msk.f32.gmra.mrb[8].mxu0 %vm687_vm1, %v1431_v10 }
 0x3be   :  { %v760_v56 = vpop.f32.mrb[4].mxu1  ;;  %v837_v57 = vpop.f32.mrb[6].mxu0 }
 0x3bf   :  { %v858_v58 = vadd.f32 %v851_v55, %v760_v56  ;;  %v860_v59 = vadd.f32 %v851_v55, %v837_v57  ;;  %v762_v2 = vpop.f32.mrb[5].mxu1  ;;  %v839_v60 = vpop.f32.mrb[7].mxu0 }
 0x3c0   :  { %v859_v61 = vadd.f32 %v851_v55, %v762_v2  ;;  %v861_v62 = vadd.f32 %v851_v55, %v839_v60 }
 0x3c1   :  { %866 = vst [vmem:[#allocation2] sm:$0xff] %v858_v58  ;;  %868 = vst [vmem:[#allocation2 + $0x10] sm:$0xff] %v860_v59 }
 0x3c2   :  { %867 = vst [vmem:[#allocation2 + $0x8] sm:$0xff] %v859_v61  ;;  %869 = vst [vmem:[#allocation2 + $0x18] sm:$0xff] %v861_v62  ;;  %v766_v0 = vpop.f32.mrb[6].mxu1  ;;  %v843_v1 = vpop.f32.mrb[8].mxu0 }
 0x3c3   :  { %v862_v3 = vadd.f32 %v856_v63, %v766_v0  ;;  %v864_v5 = vadd.f32 %v856_v63, %v843_v1  ;;  %v768_v6 = vpop.f32.mrb[7].mxu1  ;;  %v845_v7 = vpop.f32.mrb[9].mxu0 }
 0x3c4   :  { %v863_v8 = vadd.f32 %v856_v63, %v768_v6  ;;  %v865_v9 = vadd.f32 %v856_v63, %v845_v7 }
 0x3c5   :  { %870 = vst [vmem:[#allocation2 + $0x20] sm:$0xff] %v862_v3  ;;  %872 = vst [vmem:[#allocation2 + $0x30] sm:$0xff] %v864_v5 }
 0x3c6   :  { %871 = vst [vmem:[#allocation2 + $0x28] sm:$0xff] %v863_v8  ;;  %873 = vst [vmem:[#allocation2 + $0x38] sm:$0xff] %v865_v9 }
 0x3c7   :  { %1124 = shalt.err (!%p1121_p4)
}
 0x3c8   :  { %s1125_s11 = scalar_lea.hbm %s1549_s4, 1024 }
 0x3c9   :  { %p1126_p5 = scmp.ne.s32.totalorder %s1549_s4, %s1125_s11  ;;  %p1129_p6 = scmp.lt.u32.totalorder %s1125_s11, %s1549_s4 }
 0x3cb   :  { %p1131_p7 = pnand %p1129_p6, %p1126_p5 }
 0x3cd   :  { %1134 = shalt.err (!%p1131_p7)
}
 0x3ce   :  { %s1144_s16 = smov 512   ;;  %s1145_s17 = smov 32  }
 0x3cf   :  { %885 = dma.vmem_to_hbm [thread:$0]  %s880_s7, 1024, %s1549_s4, [#allocation3], %s1144_s16, %s1144_s16, %s1145_s17  }
 0x3d0   :  { %1135 = dma.done.wait [#allocation3], 1024  }
 0x3d1   :  { %1136 = vsyncadd [#allocation3], 4294966272 }
 0x3d2   :  { %889 = vsyncpa [#allocation3], 1 }

</bundles_post_ra>
